<compile_context>
chip_gen: v7x
topology: tpu7x:2x2x1
jax: 0.10.0
libtpu: 0.0.40
codegen_flags: <defaults>
</compile_context>

<pallas_src>
import jax
import jax.numpy as jnp
from jax.experimental import pallas as pl
from jax.experimental.pallas import tpu as pltpu

HIDDEN_BRANCH = 128   # width of each of the three branch Linear layers
HIDDEN_FC = 256       # width of the trunk hidden layer
OUT_LANES = 128       # lane-dense padding of the output (action_dim <= 128)
MAX_ROWS_PER_STEP = 256  # batch tile: single step up to 256 rows, else gridded


def _multi_ax_kernel(ma_ref, xas_ref, ctx_ref,
                     w_as_ref, b_as_ref, wc_ref, bc_ref,
                     w1_as_ref, w1c_ref, b1_ref,
                     w2_ref, b2_ref,
                     out_ref):
    f32 = jnp.float32
    bf16 = jnp.bfloat16

    # Action & state branches fused into one block-diagonal Linear + ReLU.
    # Columns 0:128 = action branch, 128:256 = state branch (torch cat order).
    h_as = jnp.dot(xas_ref[...].astype(bf16), w_as_ref[...],
                   preferred_element_type=f32)
    h_as = jnp.maximum(h_as + b_as_ref[...], 0.0)                  # [TB, 256]

    # Context branch Linear(1, 128): broadcast outer product on the VPU.
    h_c = jnp.maximum(ctx_ref[...] * wc_ref[...] + bc_ref[...], 0.0)  # [TB, 128]

    # fc1 over the concat (action, state, context) without materializing it.
    h = jnp.dot(h_as.astype(bf16), w1_as_ref[...], preferred_element_type=f32)
    h = h + jnp.dot(h_c.astype(bf16), w1c_ref[...], preferred_element_type=f32)
    h = jnp.maximum(h + b1_ref[...], 0.0)                          # [TB, 256]

    # Output layer (columns zero-padded to 128 lanes) + tanh * max_action.
    o = jnp.dot(h.astype(bf16), w2_ref[...], preferred_element_type=f32)
    out_ref[...] = (ma_ref[0, 0] * jnp.tanh(o + b2_ref[...])).astype(out_ref.dtype)


def init_params(key, state_dim, action_dim):
    """PyTorch Linear default init: U(-1/sqrt(fan_in), 1/sqrt(fan_in)).

    Weights are stored as [in_features, out_features] (so y = x @ W + b,
    mathematically identical to torch's x @ W.T + b)."""
    def linear(k, fan_in, fan_out):
        kw, kb = jax.random.split(k)
        bound = 1.0 / jnp.sqrt(jnp.float32(fan_in))
        w = jax.random.uniform(kw, (fan_in, fan_out), jnp.float32, -bound, bound)
        b = jax.random.uniform(kb, (1, fan_out), jnp.float32, -bound, bound)
        return w, b

    ks, ka, kc, k1, k2 = jax.random.split(key, 5)
    w_s, b_s = linear(ks, state_dim, HIDDEN_BRANCH)
    w_a, b_a = linear(ka, action_dim, HIDDEN_BRANCH)
    w_c, b_c = linear(kc, 1, HIDDEN_BRANCH)
    w1, b1 = linear(k1, 3 * HIDDEN_BRANCH, HIDDEN_FC)
    w2, b2 = linear(k2, HIDDEN_FC, action_dim)
    return {"w_s": w_s, "b_s": b_s, "w_a": w_a, "b_a": b_a,
            "w_c": w_c, "b_c": b_c, "w1": w1, "b1": b1, "w2": w2, "b2": b2}


def pack_params(params):
    """One-time packing: bf16 weights, fused block-diag action/state branch,
    split fc1 (action|state vs context), lane-padded output layer."""
    bf16 = jnp.bfloat16
    A = params["w_a"].shape[0]          # action_dim (fan_in of action_fc)
    S = params["w_s"].shape[0]          # state_dim
    action_dim = params["w2"].shape[1]
    assert action_dim <= OUT_LANES
    pad = OUT_LANES - action_dim

    # Block-diagonal [A+S, 256]: rows 0:A -> action cols 0:128,
    #                            rows A:A+S -> state cols 128:256.
    w_as = jnp.zeros((A + S, 2 * HIDDEN_BRANCH), jnp.float32)
    w_as = w_as.at[:A, :HIDDEN_BRANCH].set(params["w_a"])
    w_as = w_as.at[A:, HIDDEN_BRANCH:].set(params["w_s"])

    return {
        "w_as": w_as.astype(bf16),
        "b_as": jnp.concatenate([params["b_a"], params["b_s"]], axis=1),
        "w_c": params["w_c"],                     # f32: VPU broadcast path
        "b_c": params["b_c"],
        "w1_as": params["w1"][:2 * HIDDEN_BRANCH, :].astype(bf16),   # [256, 256]
        "w1_c": params["w1"][2 * HIDDEN_BRANCH:, :].astype(bf16),    # [128, 256]
        "b1": params["b1"],
        "w2": jnp.pad(params["w2"], ((0, 0), (0, pad))).astype(bf16),
        "b2": jnp.pad(params["b2"], ((0, 0), (0, pad))),
        "action_dim": action_dim,
        "as_dim": A + S,
    }


def multi_ax_forward(state, action, context, packed, max_action):
    """state: [B, state_dim], action: [B, action_dim], context: [B, 1] (f32)."""
    B = state.shape[0]
    A = packed["action_dim"]
    AS = packed["as_dim"]

    # Pad batch to sublane height; tile it when large so the batch grid axis
    # pipelines activations and shards across TensorCores (megacore).
    Bp = ((B + 7) // 8) * 8
    if Bp <= MAX_ROWS_PER_STEP:
        TB = Bp
    else:
        TB = MAX_ROWS_PER_STEP
        Bp = ((Bp + TB - 1) // TB) * TB
    grid = (Bp // TB,)

    def pad_b(x):
        return x if x.shape[0] == Bp else jnp.pad(x, ((0, Bp - x.shape[0]), (0, 0)))

    # torch cat order is (action, state, context) -> feed [action | state].
    x_as = pad_b(jnp.concatenate([action, state], axis=1))    # [Bp, A+S]
    ctx = pad_b(context)                                      # [Bp, 1]
    ma = jnp.full((1, 1), max_action, dtype=jnp.float32)

    vmem = pltpu.MemorySpace.VMEM
    smem = pltpu.MemorySpace.SMEM
    rowmap = lambda i: (i, 0)     # batch-tiled operands
    fixmap = lambda i: (0, 0)     # VMEM-resident weights (fetched once)

    def wspec(arr):
        return pl.BlockSpec(arr.shape, fixmap, memory_space=vmem)

    in_specs = [
        pl.BlockSpec((1, 1), fixmap, memory_space=smem),          # max_action
        pl.BlockSpec((TB, AS), rowmap, memory_space=vmem),        # [action|state]
        pl.BlockSpec((TB, 1), rowmap, memory_space=vmem),         # context
        wspec(packed["w_as"]), wspec(packed["b_as"]),
        wspec(packed["w_c"]), wspec(packed["b_c"]),
        wspec(packed["w1_as"]), wspec(packed["w1_c"]), wspec(packed["b1"]),
        wspec(packed["w2"]), wspec(packed["b2"]),
    ]

    out = pl.pallas_call(
        _multi_ax_kernel,
        out_shape=jax.ShapeDtypeStruct((Bp, OUT_LANES), jnp.float32),
        grid=grid,
        in_specs=in_specs,
        out_specs=pl.BlockSpec((TB, OUT_LANES), rowmap, memory_space=vmem),
        compiler_params=pltpu.CompilerParams(
            dimension_semantics=("parallel",)),
    )(ma, x_as, ctx,
      packed["w_as"], packed["b_as"], packed["w_c"], packed["b_c"],
      packed["w1_as"], packed["w1_c"], packed["b1"],
      packed["w2"], packed["b2"])
    return out[:B, :A]


def multi_ax_reference(state, action, context, params, max_action):
    """Pure-JAX reference mirroring the kernel's bf16-weight / f32-accumulate math."""
    bf16 = jnp.bfloat16
    f32 = jnp.float32

    def lin(x, w, b):
        return jnp.dot(x.astype(bf16), w.astype(bf16),
                       preferred_element_type=f32) + b

    ha = jnp.maximum(lin(action, params["w_a"], params["b_a"]), 0.0)
    hs = jnp.maximum(lin(state, params["w_s"], params["b_s"]), 0.0)
    hc = jnp.maximum(context * params["w_c"] + params["b_c"], 0.0)
    h = jnp.concatenate([ha, hs, hc], axis=1)                 # (action, state, context)
    h1 = jnp.maximum(lin(h, params["w1"], params["b1"]), 0.0)
    return max_action * jnp.tanh(lin(h1, params["w2"], params["b2"]))


if __name__ == "__main__":
    key = jax.random.PRNGKey(0)
    k_s, k_a, k_c, k_p = jax.random.split(key, 4)

    batch = 2
    state_dim = 16
    action_dim = 8
    max_action = 1.0

    state = jax.random.normal(k_s, (batch, state_dim), jnp.float32)
    action = jax.random.normal(k_a, (batch, action_dim), jnp.float32)
    context = jax.random.normal(k_c, (batch, 1), jnp.float32)

    params = init_params(k_p, state_dim, action_dim)
    packed = pack_params(params)

    out = multi_ax_forward(state, action, context, packed, max_action)
    out = jax.block_until_ready(out)

    ref = multi_ax_reference(state, action, context, params, max_action)
    assert out.shape == (batch, action_dim)
    assert jnp.allclose(out, ref, atol=1e-3, rtol=1e-3), (out, ref)

    print("KERNEL_OK")
</pallas_src>

<mosaic_0001>
module attributes {stable_mosaic.version = 11 : i64} {
  func.func @_multi_ax_kernel(%arg0: i32, %arg1: memref<1x1xf32, #tpu.memory_space<smem>>, %arg2: memref<8x24xf32, #tpu.memory_space<vmem>>, %arg3: memref<8x1xf32, #tpu.memory_space<vmem>>, %arg4: memref<24x256xbf16, #tpu.memory_space<vmem>>, %arg5: memref<1x256xf32, #tpu.memory_space<vmem>>, %arg6: memref<1x128xf32, #tpu.memory_space<vmem>>, %arg7: memref<1x128xf32, #tpu.memory_space<vmem>>, %arg8: memref<256x256xbf16, #tpu.memory_space<vmem>>, %arg9: memref<128x256xbf16, #tpu.memory_space<vmem>>, %arg10: memref<1x256xf32, #tpu.memory_space<vmem>>, %arg11: memref<256x128xbf16, #tpu.memory_space<vmem>>, %arg12: memref<1x128xf32, #tpu.memory_space<vmem>>, %arg13: memref<8x128xf32, #tpu.memory_space<vmem>>) attributes {dimension_semantics = [#tpu.dimension_semantics<parallel>], iteration_bounds = array<i64: 1>, scalar_prefetch = 0 : i64, scratch_operands = 0 : i64, tpu.core_type = #tpu.core_type<tc>, window_params = [{transform_indices = @transform_0, window_bounds = array<i64: 1, 1>}, {transform_indices = @transform_1, window_bounds = array<i64: 8, 24>}, {transform_indices = @transform_2, window_bounds = array<i64: 8, 1>}, {pipeline_mode = #tpu.pipeline_mode<synchronous>, transform_indices = @transform_3, window_bounds = array<i64: 24, 256>}, {pipeline_mode = #tpu.pipeline_mode<synchronous>, transform_indices = @transform_4, window_bounds = array<i64: 1, 256>}, {pipeline_mode = #tpu.pipeline_mode<synchronous>, transform_indices = @transform_5, window_bounds = array<i64: 1, 128>}, {pipeline_mode = #tpu.pipeline_mode<synchronous>, transform_indices = @transform_6, window_bounds = array<i64: 1, 128>}, {pipeline_mode = #tpu.pipeline_mode<synchronous>, transform_indices = @transform_7, window_bounds = array<i64: 256, 256>}, {pipeline_mode = #tpu.pipeline_mode<synchronous>, transform_indices = @transform_8, window_bounds = array<i64: 128, 256>}, {pipeline_mode = #tpu.pipeline_mode<synchronous>, transform_indices = @transform_9, window_bounds = array<i64: 1, 256>}, {pipeline_mode = #tpu.pipeline_mode<synchronous>, transform_indices = @transform_10, window_bounds = array<i64: 256, 128>}, {pipeline_mode = #tpu.pipeline_mode<synchronous>, transform_indices = @transform_11, window_bounds = array<i64: 1, 128>}, {transform_indices = @transform_12, window_bounds = array<i64: 8, 128>}]} {
    %c0 = arith.constant 0 : index
    %c0_0 = arith.constant 0 : index
    %0 = vector.load %arg2[%c0, %c0_0] : memref<8x24xf32, #tpu.memory_space<vmem>>, vector<8x24xf32>
    %1 = arith.truncf %0 : vector<8x24xf32> to vector<8x24xbf16>
    %c0_1 = arith.constant 0 : index
    %c0_2 = arith.constant 0 : index
    %2 = vector.load %arg4[%c0_1, %c0_2] : memref<24x256xbf16, #tpu.memory_space<vmem>>, vector<24x256xbf16>
    %cst = arith.constant dense<0.000000e+00> : vector<8x256xf32>
    %3 = tpu.matmul %1, %2, %cst {dimension_numbers = #tpu.dot_dimension_numbers<[1], [0], [0], [1], [0, 0, 1, 1], [], []>} : vector<8x24xbf16>, vector<24x256xbf16>, vector<8x256xf32> -> vector<8x256xf32>
    %c0_3 = arith.constant 0 : index
    %c0_4 = arith.constant 0 : index
    %4 = vector.load %arg5[%c0_3, %c0_4] : memref<1x256xf32, #tpu.memory_space<vmem>>, vector<1x256xf32>
    %5 = vector.broadcast %4 : vector<1x256xf32> to vector<8x256xf32>
    %6 = arith.addf %3, %5 : vector<8x256xf32>
    %cst_5 = arith.constant 0.000000e+00 : f32
    %7 = vector.broadcast %cst_5 : f32 to vector<8x256xf32>
    %8 = arith.maximumf %6, %7 : vector<8x256xf32>
    %c0_6 = arith.constant 0 : index
    %c0_7 = arith.constant 0 : index
    %9 = vector.load %arg3[%c0_6, %c0_7] : memref<8x1xf32, #tpu.memory_space<vmem>>, vector<8x1xf32>
    %c0_8 = arith.constant 0 : index
    %c0_9 = arith.constant 0 : index
    %10 = vector.load %arg6[%c0_8, %c0_9] : memref<1x128xf32, #tpu.memory_space<vmem>>, vector<1x128xf32>
    %11 = vector.broadcast %9 : vector<8x1xf32> to vector<8x128xf32>
    %12 = vector.broadcast %10 : vector<1x128xf32> to vector<8x128xf32>
    %13 = arith.mulf %11, %12 : vector<8x128xf32>
    %c0_10 = arith.constant 0 : index
    %c0_11 = arith.constant 0 : index
    %14 = vector.load %arg7[%c0_10, %c0_11] : memref<1x128xf32, #tpu.memory_space<vmem>>, vector<1x128xf32>
    %15 = vector.broadcast %14 : vector<1x128xf32> to vector<8x128xf32>
    %16 = arith.addf %13, %15 : vector<8x128xf32>
    %cst_12 = arith.constant 0.000000e+00 : f32
    %17 = vector.broadcast %cst_12 : f32 to vector<8x128xf32>
    %18 = arith.maximumf %16, %17 : vector<8x128xf32>
    %19 = arith.truncf %8 : vector<8x256xf32> to vector<8x256xbf16>
    %c0_13 = arith.constant 0 : index
    %c0_14 = arith.constant 0 : index
    %20 = vector.load %arg8[%c0_13, %c0_14] : memref<256x256xbf16, #tpu.memory_space<vmem>>, vector<256x256xbf16>
    %cst_15 = arith.constant dense<0.000000e+00> : vector<8x256xf32>
    %21 = tpu.matmul %19, %20, %cst_15 {dimension_numbers = #tpu.dot_dimension_numbers<[1], [0], [0], [1], [0, 0, 1, 1], [], []>} : vector<8x256xbf16>, vector<256x256xbf16>, vector<8x256xf32> -> vector<8x256xf32>
    %22 = arith.truncf %18 : vector<8x128xf32> to vector<8x128xbf16>
    %c0_16 = arith.constant 0 : index
    %c0_17 = arith.constant 0 : index
    %23 = vector.load %arg9[%c0_16, %c0_17] : memref<128x256xbf16, #tpu.memory_space<vmem>>, vector<128x256xbf16>
    %cst_18 = arith.constant dense<0.000000e+00> : vector<8x256xf32>
    %24 = tpu.matmul %22, %23, %cst_18 {dimension_numbers = #tpu.dot_dimension_numbers<[1], [0], [0], [1], [0, 0, 1, 1], [], []>} : vector<8x128xbf16>, vector<128x256xbf16>, vector<8x256xf32> -> vector<8x256xf32>
    %25 = arith.addf %21, %24 : vector<8x256xf32>
    %c0_19 = arith.constant 0 : index
    %c0_20 = arith.constant 0 : index
    %26 = vector.load %arg10[%c0_19, %c0_20] : memref<1x256xf32, #tpu.memory_space<vmem>>, vector<1x256xf32>
    %27 = vector.broadcast %26 : vector<1x256xf32> to vector<8x256xf32>
    %28 = arith.addf %25, %27 : vector<8x256xf32>
    %cst_21 = arith.constant 0.000000e+00 : f32
    %29 = vector.broadcast %cst_21 : f32 to vector<8x256xf32>
    %30 = arith.maximumf %28, %29 : vector<8x256xf32>
    %31 = arith.truncf %30 : vector<8x256xf32> to vector<8x256xbf16>
    %c0_22 = arith.constant 0 : index
    %c0_23 = arith.constant 0 : index
    %32 = vector.load %arg11[%c0_22, %c0_23] : memref<256x128xbf16, #tpu.memory_space<vmem>>, vector<256x128xbf16>
    %cst_24 = arith.constant dense<0.000000e+00> : vector<8x128xf32>
    %33 = tpu.matmul %31, %32, %cst_24 {dimension_numbers = #tpu.dot_dimension_numbers<[1], [0], [0], [1], [0, 0, 1, 1], [], []>} : vector<8x256xbf16>, vector<256x128xbf16>, vector<8x128xf32> -> vector<8x128xf32>
    %c0_25 = arith.constant 0 : index
    %c0_26 = arith.constant 0 : index
    %34 = memref.load %arg1[%c0_25, %c0_26] : memref<1x1xf32, #tpu.memory_space<smem>>
    %c0_27 = arith.constant 0 : index
    %c0_28 = arith.constant 0 : index
    %35 = vector.load %arg12[%c0_27, %c0_28] : memref<1x128xf32, #tpu.memory_space<vmem>>, vector<1x128xf32>
    %36 = vector.broadcast %35 : vector<1x128xf32> to vector<8x128xf32>
    %37 = arith.addf %33, %36 : vector<8x128xf32>
    %38 = math.tanh %37 : vector<8x128xf32>
    %39 = vector.broadcast %34 : f32 to vector<8x128xf32>
    %40 = arith.mulf %39, %38 : vector<8x128xf32>
    %c0_29 = arith.constant 0 : index
    %c0_30 = arith.constant 0 : index
    %41 = vector.load %arg13[%c0_29, %c0_30] : memref<8x128xf32, #tpu.memory_space<vmem>>, vector<8x128xf32>
    tpu.vector_store %arg13[%c0_29, %c0_30], %40 {strides = array<i32>} : memref<8x128xf32, #tpu.memory_space<vmem>>, vector<8x128xf32>,
    return
  }
  func.func @transform_0(%arg0: i32) -> (i32, i32) {
    %c0_i32 = arith.constant 0 : i32
    %c0_i32_0 = arith.constant 0 : i32
    %c0_i32_1 = arith.constant 0 : i32
    return %c0_i32, %c0_i32_0 : i32, i32
  }
  func.func @transform_1(%arg0: i32) -> (i32, i32) {
    %c0_i32 = arith.constant 0 : i32
    %c0_i32_0 = arith.constant 0 : i32
    return %arg0, %c0_i32 : i32, i32
  }
  func.func @transform_2(%arg0: i32) -> (i32, i32) {
    %c0_i32 = arith.constant 0 : i32
    %c0_i32_0 = arith.constant 0 : i32
    return %arg0, %c0_i32 : i32, i32
  }
  func.func @transform_3(%arg0: i32) -> (i32, i32) {
    %c0_i32 = arith.constant 0 : i32
    %c0_i32_0 = arith.constant 0 : i32
    %c0_i32_1 = arith.constant 0 : i32
    return %c0_i32, %c0_i32_0 : i32, i32
  }
  func.func @transform_4(%arg0: i32) -> (i32, i32) {
    %c0_i32 = arith.constant 0 : i32
    %c0_i32_0 = arith.constant 0 : i32
    %c0_i32_1 = arith.constant 0 : i32
    return %c0_i32, %c0_i32_0 : i32, i32
  }
  func.func @transform_5(%arg0: i32) -> (i32, i32) {
    %c0_i32 = arith.constant 0 : i32
    %c0_i32_0 = arith.constant 0 : i32
    %c0_i32_1 = arith.constant 0 : i32
    return %c0_i32, %c0_i32_0 : i32, i32
  }
  func.func @transform_6(%arg0: i32) -> (i32, i32) {
    %c0_i32 = arith.constant 0 : i32
    %c0_i32_0 = arith.constant 0 : i32
    %c0_i32_1 = arith.constant 0 : i32
    return %c0_i32, %c0_i32_0 : i32, i32
  }
  func.func @transform_7(%arg0: i32) -> (i32, i32) {
    %c0_i32 = arith.constant 0 : i32
    %c0_i32_0 = arith.constant 0 : i32
    %c0_i32_1 = arith.constant 0 : i32
    return %c0_i32, %c0_i32_0 : i32, i32
  }
  func.func @transform_8(%arg0: i32) -> (i32, i32) {
    %c0_i32 = arith.constant 0 : i32
    %c0_i32_0 = arith.constant 0 : i32
    %c0_i32_1 = arith.constant 0 : i32
    return %c0_i32, %c0_i32_0 : i32, i32
  }
  func.func @transform_9(%arg0: i32) -> (i32, i32) {
    %c0_i32 = arith.constant 0 : i32
    %c0_i32_0 = arith.constant 0 : i32
    %c0_i32_1 = arith.constant 0 : i32
    return %c0_i32, %c0_i32_0 : i32, i32
  }
  func.func @transform_10(%arg0: i32) -> (i32, i32) {
    %c0_i32 = arith.constant 0 : i32
    %c0_i32_0 = arith.constant 0 : i32
    %c0_i32_1 = arith.constant 0 : i32
    return %c0_i32, %c0_i32_0 : i32, i32
  }
  func.func @transform_11(%arg0: i32) -> (i32, i32) {
    %c0_i32 = arith.constant 0 : i32
    %c0_i32_0 = arith.constant 0 : i32
    %c0_i32_1 = arith.constant 0 : i32
    return %c0_i32, %c0_i32_0 : i32, i32
  }
  func.func @transform_12(%arg0: i32) -> (i32, i32) {
    %c0_i32 = arith.constant 0 : i32
    %c0_i32_0 = arith.constant 0 : i32
    return %arg0, %c0_i32 : i32, i32
  }
}

</mosaic_0001>

<bundles_post_ra>
// kernel: tpu_custom_call.1
= control target key start
LH: loop header
LB: loop body
LE: loop exit
PB: predicated region body
PF: predicated region fallthrough
CT: control target
= control target key end

     0   :  { %18 = vsyncpa [#allocation4], 0  ;;  %s1297_s0 = inlined_call_operand.<no memory space> [shape: f32[1,1], index: 0, kind: input, shape index: {}]   ;;  %s1298_s1 = inlined_call_operand.vmem [shape: f32[8,24], index: 1, kind: input, shape index: {}]   ;;  %s1299_s2 = inlined_call_operand.vmem [shape: f32[8,1], index: 2, kind: input, shape index: {}]   ;;  %s1300_s3 = inlined_call_operand.hbm [shape: bf16[24,256], index: 3, kind: input, shape index: {}]   ;;  %s1301_s4 = inlined_call_operand.vmem [shape: f32[1,256], index: 4, kind: input, shape index: {}]   ;;  %s1302_s5 = inlined_call_operand.vmem [shape: f32[1,128], index: 5, kind: input, shape index: {}]   ;;  %s1303_s6 = inlined_call_operand.vmem [shape: f32[1,128], index: 6, kind: input, shape index: {}]   ;;  %s1304_s7 = inlined_call_operand.hbm [shape: bf16[256,256], index: 7, kind: input, shape index: {}]   ;;  %s1305_s8 = inlined_call_operand.hbm [shape: bf16[128,256], index: 8, kind: input, shape index: {}]   ;;  %s1306_s9 = inlined_call_operand.vmem [shape: f32[1,256], index: 9, kind: input, shape index: {}]   ;;  %s1307_s10 = inlined_call_operand.hbm [shape: bf16[256,128], index: 10, kind: input, shape index: {}]   ;;  %s1308_s11 = inlined_call_operand.vmem [shape: f32[1,128], index: 11, kind: input, shape index: {}]   ;;  %s1309_s12 = inlined_call_operand.hbm [shape: f32[8,128], index: 12, kind: output, shape index: {}]  }
   0x1   :  { %19 = vsyncpa [#allocation7], 0 }
   0x2   :  { %20 = vsyncpa [#allocation10], 0 }
   0x3   :  { %21 = vsyncpa [#allocation5], 0  ;;  %s1115_s21 = smov [#allocation6]   ;;  %s1116_s23 = smov [#allocation3]  }
   0x4   :  { %s51_s22 = sshll.u32 %s1115_s21, 4  ;;  %s33_s24 = sshll.u32 %s1116_s23, 4  ;;  %s52_s22 = int_to_ptr.vmem [resolvable:$true] %s51_s22  ;;  %s1190_s24 = int_to_ptr.vmem [resolvable:$true] %s33_s24 }
   0x5   :  { %s997_s27 = scalar_lea.hbm %s1304_s7, 4096 }
   0x6   :  { %p998_p0 = scmp.ne.s32.totalorder %s1304_s7, %s997_s27  ;;  %p1001_p1 = scmp.lt.u32.totalorder %s997_s27, %s1304_s7 }
   0x8   :  { %p1003_p2 = pnand %p1001_p1, %p998_p0 }
   0xa   :  { %1006 = shalt.err (!%p1003_p2)
}
   0xb   :  { %s1007_s14 = scalar_lea.vmem %s52_s22, 4096  ;;  %p1012_p4 = scmp.lt.s32.totalorder %s52_s22, %s52_s22 }
   0xc   :  { %p1008_p3 = scmp.ne.s32.totalorder %s52_s22, %s1007_s14  ;;  %p1013_p5 = scmp.lt.s32.totalorder %s1007_s14, %s1007_s14 }
   0xe   :  { %p1014_p6 = por %p1013_p5, %p1012_p4 }
  0x10   :  { %p1015_p7 = pnand %p1014_p6, %p1008_p3 }
  0x12   :  { %1018 = shalt.err (!%p1015_p7)
}
  0x13   :  { %s1117_s15 = smov 128   ;;  %s1118_s16 = smov 8  }
  0x14   :  { %57 = dma.hbm_to_vmem [thread:$0]  %s1304_s7, 4096, %s52_s22, [#allocation7], %s1117_s15, %s1117_s15, %s1118_s16  }
  0x15   :  { %s1019_s21 = scalar_lea.hbm %s1300_s3, 384 }
  0x16   :  { %p1020_p8 = scmp.ne.s32.totalorder %s1300_s3, %s1019_s21  ;;  %p1023_p9 = scmp.lt.u32.totalorder %s1019_s21, %s1300_s3 }
  0x18   :  { %p1025_p10 = pnand %p1023_p9, %p1020_p8 }
  0x1a   :  { %1028 = shalt.err (!%p1025_p10)
}
  0x1b   :  { %s1029_s28 = scalar_lea.vmem %s1190_s24, 384  ;;  %p1034_p12 = scmp.lt.s32.totalorder %s1190_s24, %s1190_s24 }
  0x1c   :  { %p1030_p11 = scmp.ne.s32.totalorder %s1190_s24, %s1029_s28  ;;  %p1035_p13 = scmp.lt.s32.totalorder %s1029_s28, %s1029_s28 }
  0x1e   :  { %p1036_p0 = por %p1035_p13, %p1034_p12 }
  0x20   :  { %p1037_p1 = pnand %p1036_p0, %p1030_p11 }
  0x22   :  { %1040 = shalt.err (!%p1037_p1)
}
  0x23   :  { %39 = dma.hbm_to_vmem [thread:$0]  %s1300_s3, 384, %s1190_s24, [#allocation4], %s1117_s15, %s1117_s15, %s1118_s16  }
  0x24   :  { %s1119_s29 = smov [#allocation8]   ;;  %s1120_s13 = smov [#allocation9]  }
  0x25   :  { %s63_s30 = sshll.u32 %s1119_s29, 4  ;;  %s77_s14 = sshll.u32 %s1120_s13, 4  ;;  %s64_s30 = int_to_ptr.vmem [resolvable:$true] %s63_s30  ;;  %s1227_s14 = int_to_ptr.vmem [resolvable:$true] %s77_s14 }
  0x26   :  { %s1041_s19 = scalar_lea.hbm %s1305_s8, 2048 }
  0x27   :  { %p1042_p2 = scmp.ne.s32.totalorder %s1305_s8, %s1041_s19  ;;  %p1045_p3 = scmp.lt.u32.totalorder %s1041_s19, %s1305_s8 }
  0x29   :  { %p1047_p4 = pnand %p1045_p3, %p1042_p2 }
  0x2b   :  { %1050 = shalt.err (!%p1047_p4)
}
  0x2c   :  { %s1051_s3 = scalar_lea.vmem %s64_s30, 2048  ;;  %p1056_p6 = scmp.lt.s32.totalorder %s64_s30, %s64_s30 }
  0x2d   :  { %p1052_p5 = scmp.ne.s32.totalorder %s64_s30, %s1051_s3  ;;  %p1057_p7 = scmp.lt.s32.totalorder %s1051_s3, %s1051_s3 }
  0x2f   :  { %p1058_p8 = por %p1057_p7, %p1056_p6 }
  0x31   :  { %p1059_p9 = pnand %p1058_p8, %p1052_p5 }
  0x33   :  { %1062 = shalt.err (!%p1059_p9)
}
  0x34   :  { %69 = dma.hbm_to_vmem [thread:$0]  %s1305_s8, 2048, %s64_s30, [#allocation7], %s1117_s15, %s1117_s15, %s1118_s16  }
  0x35   :  { %s1063_s7 = scalar_lea.hbm %s1307_s10, 2048 }
  0x36   :  { %p1064_p10 = scmp.ne.s32.totalorder %s1307_s10, %s1063_s7  ;;  %p1067_p11 = scmp.lt.u32.totalorder %s1063_s7, %s1307_s10 }
  0x38   :  { %p1069_p12 = pnand %p1067_p11, %p1064_p10 }
  0x3a   :  { %1072 = shalt.err (!%p1069_p12)
}
  0x3b   :  { %s1073_s18 = scalar_lea.vmem %s1227_s14, 2048  ;;  %p1078_p0 = scmp.lt.s32.totalorder %s1227_s14, %s1227_s14 }
  0x3c   :  { %p1074_p13 = scmp.ne.s32.totalorder %s1227_s14, %s1073_s18  ;;  %p1079_p1 = scmp.lt.s32.totalorder %s1073_s18, %s1073_s18 }
  0x3e   :  { %p1080_p2 = por %p1079_p1, %p1078_p0 }
  0x40   :  { %p1081_p3 = pnand %p1080_p2, %p1074_p13 }
  0x42   :  { %1084 = shalt.err (!%p1081_p3)
}
  0x43   :  { %s1121_s8 = smov 64   ;;  %s1122_s15 = smov 4  }
  0x44   :  { %83 = dma.hbm_to_vmem [thread:$0]  %s1307_s10, 2048, %s1227_s14, [#allocation10], %s1121_s8, %s1121_s8, %s1122_s15  }
  0x45   :  { %1107 = dma.done.wait [#allocation4], 384  }
  0x46   :  { %1108 = vsyncadd [#allocation4], 4294966912 }
  0x47   :  { %1109 = dma.done.wait [#allocation7], 6144  }
  0x48   :  { %1110 = vsyncadd [#allocation7], 4294961152 }
  0x49   :  { %1111 = dma.done.wait [#allocation10], 2048  }
  0x4a   :  { %1112 = vsyncadd [#allocation10], 4294965248  ;;  %v1123_v0 = vmov 0   ;;  %v902_v1 = vld [vmem:[#allocation3 + $0x4] ss:$8 sps:$4 sm:$0xff]   ;;  %v103_v3 = vld [vmem:[#allocation3 + $0x10] sm:$0xff] }
  0x4b   :  { %174 = vmatprep.mubr.bf16.mxu0 %v1123_v0  ;;  %901 = vset.pattern.permute.xlu0 %v1123_v0  ;;  %v904_v2 = vld [vmem:[#allocation3] ss:$8 sps:$4 sm:$0xff]   ;;  %vm135_vm0 = vcmask 1043456   ;;  %v799_v4 = vcombine.high %v103_v3, %v103_v3  ;;  %v798_v5 = vcombine.low %v103_v3, %v103_v3  ;;  %v909_v9 = vld [vmem:[#allocation6 + $0x4] ss:$8 sps:$4 sm:$0xff]   ;;  %vm131_vm1 = vcmask 195584  }
  0x4c   :  { %371 = vmatprep.mubr.bf16.mxu1 %v1123_v0  ;;  %142 = vmatprep.subr.bf16.mxu0 %v902_v1  ;;  %v185_v6 = vld [vmem:[%s1299_s2] sm:$0xff]  ;;  %v912_v12 = vld [vmem:[#allocation6 + $0x14] ss:$8 sps:$4 sm:$0xff]   ;;  %v910_v13 = vld [vmem:[#allocation6 + $0x10] ss:$8 sps:$4 sm:$0xff]   ;;  %s1124_s27 = smov [#allocation11]  }
  0x4d   :  { %143 = vmatpush1.bf16.msra.mxu0 %v904_v2  ;;  %v99_v7 = vld [vmem:[%s1298_s1] sm:$0xff]  ;;  %189 = vperm.xlu0 %901, %v185_v6   ;;  %v137_v8 = vsel %vm135_vm0, %v798_v5, 0  ;;  %v918_v18 = vld [vmem:[#allocation6 + $0x34] ss:$8 sps:$4 sm:$0xff]   ;;  %v939_v20 = vld [vmem:[#allocation8 + $0x10] ss:$8 sps:$4 sm:$0xff]  }
  0x4e   :  { %800 = vmatprep.subr.msk.bf16.mxu0 %vm135_vm0, %v799_v4  ;;  %v100_v10 = vpack.c.bf16 %v99_v7, %v99_v7  ;;  %v907_v11 = vld [vmem:[#allocation6] ss:$8 sps:$4 sm:$0xff]   ;;  %v915_v14 = vld [vmem:[#allocation6 + $0x24] ss:$8 sps:$4 sm:$0xff]   ;;  %v937_v19 = vld [vmem:[#allocation8 + $0x14] ss:$8 sps:$4 sm:$0xff]  }
  0x4f   :  { %v931_v15 = vld [vmem:[#allocation8 + $0x4] ss:$8 sps:$4 sm:$0xff]   ;;  %v933_v16 = vld [vmem:[#allocation8] ss:$8 sps:$4 sm:$0xff]   ;;  %v916_v21 = vld [vmem:[#allocation6 + $0x30] ss:$8 sps:$4 sm:$0xff]  }
  0x50   :  { %v913_v17 = vld [vmem:[#allocation6 + $0x20] ss:$8 sps:$4 sm:$0xff]   ;;  %339 = vmatprep.subr.bf16.mxu1 %v931_v15  ;;  %v943_v22 = vld [vmem:[#allocation8 + $0x24] ss:$8 sps:$4 sm:$0xff]   ;;  %v949_v25 = vld [vmem:[#allocation8 + $0x34] ss:$8 sps:$4 sm:$0xff]  }
  0x51   :  { %145 = vmatpush1.bf16.msra.mxu0 %v137_v8  ;;  %340 = vmatpush1.bf16.msra.mxu1 %v933_v16  ;;  %v921_v23 = vld [vmem:[#allocation6 + $0x44] ss:$8 sps:$4 sm:$0xff]   ;;  %v945_v24 = vld [vmem:[#allocation8 + $0x20] ss:$8 sps:$4 sm:$0xff]   ;;  %v924_v27 = vld [vmem:[#allocation6 + $0x54] ss:$8 sps:$4 sm:$0xff]  }
  0x52   :  { %540 = vmatprep.subr.bf16.mxu0 %v909_v9  ;;  %341 = vmatprep.subr.bf16.mxu1 %v937_v19  ;;  %v919_v26 = vld [vmem:[#allocation6 + $0x40] ss:$8 sps:$4 sm:$0xff]   ;;  %v951_v28 = vld [vmem:[#allocation8 + $0x30] ss:$8 sps:$4 sm:$0xff]   ;;  %v955_v29 = vld [vmem:[#allocation8 + $0x44] ss:$8 sps:$4 sm:$0xff]  }
  0x53   :  { %v922_v30 = vld [vmem:[#allocation6 + $0x50] ss:$8 sps:$4 sm:$0xff]   ;;  %v927_v31 = vld [vmem:[#allocation6 + $0x64] ss:$8 sps:$4 sm:$0xff]   ;;  %v957_v32 = vld [vmem:[#allocation8 + $0x40] ss:$8 sps:$4 sm:$0xff]  }
  0x54   :  { %801 = vmatmul.mubr.msk.bf16.vlgmr.msra.gmra.mrb[0].mxu0 %vm131_vm1, %v100_v10  ;;  %v925_v33 = vld [vmem:[#allocation6 + $0x60] ss:$8 sps:$4 sm:$0xff]   ;;  %v961_v34 = vld [vmem:[#allocation8 + $0x54] ss:$8 sps:$4 sm:$0xff]   ;;  %v963_v36 = vld [vmem:[#allocation8 + $0x50] ss:$8 sps:$4 sm:$0xff]  }
  0x55   :  { %541 = vmatpush1.bf16.msra.mxu0 %v907_v11  ;;  %342 = vmatpush1.bf16.msra.mxu1 %v939_v20  ;;  %v930_v35 = vld [vmem:[#allocation6 + $0x74] ss:$8 sps:$4 sm:$0xff]   ;;  %v967_v37 = vld [vmem:[#allocation8 + $0x64] ss:$8 sps:$4 sm:$0xff]   ;;  %v928_v38 = vld [vmem:[#allocation6 + $0x70] ss:$8 sps:$4 sm:$0xff]   ;;  %v106_v11 = vlaneseq }
  0x56   :  { %542 = vmatprep.subr.bf16.mxu0 %v912_v12  ;;  %343 = vmatprep.subr.bf16.mxu1 %v943_v22  ;;  %v936_v39 = vld [vmem:[#allocation6 + $0x84] ss:$8 sps:$4 sm:$0xff]   ;;  %v969_v40 = vld [vmem:[#allocation8 + $0x60] ss:$8 sps:$4 sm:$0xff]   ;;  %v942_v42 = vld [vmem:[#allocation6 + $0x94] ss:$8 sps:$4 sm:$0xff]  }
  0x57   :  { %v934_v41 = vld [vmem:[#allocation6 + $0x80] ss:$8 sps:$4 sm:$0xff]   ;;  %v940_v43 = vld [vmem:[#allocation6 + $0x90] ss:$8 sps:$4 sm:$0xff]   ;;  %v948_v44 = vld [vmem:[#allocation6 + $0xa4] ss:$8 sps:$4 sm:$0xff]  }
  0x58   :  { %v946_v45 = vld [vmem:[#allocation6 + $0xa0] ss:$8 sps:$4 sm:$0xff]   ;;  %v954_v46 = vld [vmem:[#allocation6 + $0xb4] ss:$8 sps:$4 sm:$0xff]   ;;  %v952_v47 = vld [vmem:[#allocation6 + $0xb0] ss:$8 sps:$4 sm:$0xff]  }
  0x59   :  { %543 = vmatpush1.bf16.msra.mxu0 %v910_v13  ;;  %344 = vmatpush1.bf16.msra.mxu1 %v945_v24  ;;  %v960_v48 = vld [vmem:[#allocation6 + $0xc4] ss:$8 sps:$4 sm:$0xff]   ;;  %v958_v49 = vld [vmem:[#allocation6 + $0xc0] ss:$8 sps:$4 sm:$0xff]   ;;  %v966_v50 = vld [vmem:[#allocation6 + $0xd4] ss:$8 sps:$4 sm:$0xff]  }
  0x5a   :  { %544 = vmatprep.subr.bf16.mxu0 %v915_v14  ;;  %345 = vmatprep.subr.bf16.mxu1 %v949_v25  ;;  %v964_v51 = vld [vmem:[#allocation6 + $0xd0] ss:$8 sps:$4 sm:$0xff]   ;;  %v972_v52 = vld [vmem:[#allocation6 + $0xe4] ss:$8 sps:$4 sm:$0xff]   ;;  %v970_v53 = vld [vmem:[#allocation6 + $0xe0] ss:$8 sps:$4 sm:$0xff]  }
  0x5b   :  { %v973_v54 = vld [vmem:[#allocation8 + $0x74] ss:$8 sps:$4 sm:$0xff]   ;;  %v975_v55 = vld [vmem:[#allocation8 + $0x70] ss:$8 sps:$4 sm:$0xff]   ;;  %v979_v58 = vld [vmem:[#allocation9 + $0x40] sm:$0xff]   ;;  %v107_v12 = vshrl.u32 %v106_v11, 7 }
  0x5c   :  { %v978_v56 = vld [vmem:[#allocation6 + $0xf4] ss:$8 sps:$4 sm:$0xff]   ;;  %v976_v57 = vld [vmem:[#allocation6 + $0xf0] ss:$8 sps:$4 sm:$0xff]   ;;  %v802_v59 = vld [vmem:[%s1302_s5] ss:$0 sm:$0xff] }
  0x5d   :  { %545 = vmatpush1.bf16.msra.mxu0 %v913_v17  ;;  %346 = vmatpush1.bf16.msra.mxu1 %v951_v28  ;;  %v803_v60 = vld [vmem:[%s1303_s6] ss:$0 sm:$0xff]  ;;  %v980_v1 = vld [vmem:[#allocation9] sm:$0xff]   ;;  %v983_v5 = vld [vmem:[#allocation9 + $0x50] sm:$0xff]   ;;  %v108_v13 = vsub.s32 0, %v107_v12  ;;  %v112_v15 = vsub.s32 1, %v107_v12 }
  0x5e   :  { %546 = vmatprep.subr.bf16.mxu0 %v918_v18  ;;  %347 = vmatprep.subr.bf16.mxu1 %v955_v29  ;;  %v981_v3 = vld [vmem:[#allocation9 + $0x48] sm:$0xff]   ;;  %v984_v6 = vld [vmem:[#allocation9 + $0x10] sm:$0xff]   ;;  %v985_v7 = vld [vmem:[#allocation9 + $0x58] sm:$0xff]   ;;  %s785_s28 = sshll.u32 %s1124_s27, 4  ;;  %s786_s28 = int_to_ptr.vmem [resolvable:$true] %s785_s28 }
  0x5f   :  { %v982_v4 = vld [vmem:[#allocation9 + $0x8] sm:$0xff]   ;;  %v986_v8 = vld [vmem:[#allocation9 + $0x18] sm:$0xff]   ;;  %v987_v9 = vld [vmem:[#allocation9 + $0x60] sm:$0xff]   ;;  %s1085_s7 = scalar_lea.vmem %s786_s28, 128  ;;  %p1090_p5 = scmp.lt.s32.totalorder %s786_s28, %s786_s28 }
  0x60   :  { %v988_v10 = vld [vmem:[#allocation9 + $0x20] sm:$0xff]   ;;  %v104_v14 = vld [vmem:[%s1301_s4] sm:$0x3]  ;;  %p1086_p4 = scmp.ne.s32.totalorder %s786_s28, %s1085_s7  ;;  %p1091_p6 = scmp.lt.s32.totalorder %s1085_s7, %s1085_s7 }
  0x61   :  { %547 = vmatpush1.bf16.msra.mxu0 %v916_v21  ;;  %348 = vmatpush1.bf16.msra.mxu1 %v957_v32  ;;  %v109_v16 = vrot.slane %v104_v14, %v108_v13  ;;  %v113_v17 = vrot.slane %v104_v14, %v112_v15  ;;  %v989_v25 = vld [vmem:[#allocation9 + $0x68] sm:$0xff]   ;;  %v993_v32 = vld [vmem:[#allocation9 + $0x78] sm:$0xff]  }
  0x62   :  { %548 = vmatprep.subr.bf16.mxu0 %v921_v23  ;;  %349 = vmatprep.subr.bf16.mxu1 %v961_v34  ;;  %v990_v29 = vld [vmem:[#allocation9 + $0x28] sm:$0xff]   ;;  %p1092_p7 = por %p1091_p6, %p1090_p5 }
  0x64   :  { %p1093_p8 = pnand %p1092_p7, %p1086_p4 }
  0x65   :  { %549 = vmatpush1.bf16.msra.mxu0 %v919_v26  ;;  %350 = vmatpush1.bf16.msra.mxu1 %v963_v36 }
  0x66   :  { %550 = vmatprep.subr.bf16.mxu0 %v924_v27  ;;  %351 = vmatprep.subr.bf16.mxu1 %v967_v37 }
  0x69   :  { %551 = vmatpush1.bf16.msra.mxu0 %v922_v30  ;;  %352 = vmatpush1.bf16.msra.mxu1 %v969_v40  ;;  %v991_v30 = vld [vmem:[#allocation9 + $0x70] sm:$0xff]  }
  0x6a   :  { %552 = vmatprep.subr.bf16.mxu0 %v927_v31  ;;  %353 = vmatprep.subr.bf16.mxu1 %v973_v54  ;;  %v992_v31 = vld [vmem:[#allocation9 + $0x30] sm:$0xff]   ;;  %v852_v54 = vld [vmem:[%s1308_s11] ss:$0 sm:$0xff] }
  0x6d   :  { %553 = vmatpush1.bf16.msra.mxu0 %v925_v33  ;;  %354 = vmatpush1.bf16.msra.mxu1 %v975_v55  ;;  %v994_v33 = vld [vmem:[#allocation9 + $0x38] sm:$0xff]  }
  0x6e   :  { %554 = vmatprep.subr.bf16.mxu0 %v930_v35  ;;  %869 = vmatprep.subr.bf16.mxu1 %v979_v58 }
  0x71   :  { %555 = vmatpush1.bf16.msra.mxu0 %v928_v38  ;;  %v581_v38 = vld [vmem:[%s1306_s9] sm:$0x3] }
  0x72   :  { %556 = vmatprep.subr.bf16.mxu0 %v936_v39  ;;  %v586_v39 = vrot.slane %v581_v38, %v108_v13 }
  0x75   :  { %557 = vmatpush1.bf16.msra.mxu0 %v934_v41  ;;  %v590_v41 = vrot.slane %v581_v38, %v112_v15 }
  0x76   :  { %558 = vmatprep.subr.bf16.mxu0 %v942_v42 }
  0x79   :  { %559 = vmatpush1.bf16.msra.mxu0 %v940_v43 }
  0x7a   :  { %560 = vmatprep.subr.bf16.mxu0 %v948_v44 }
  0x7d   :  { %561 = vmatpush1.bf16.msra.mxu0 %v946_v45 }
  0x7e   :  { %562 = vmatprep.subr.bf16.mxu0 %v954_v46 }
  0x81   :  { %563 = vmatpush1.bf16.msra.mxu0 %v952_v47 }
  0x82   :  { %564 = vmatprep.subr.bf16.mxu0 %v960_v48 }
  0x85   :  { %565 = vmatpush1.bf16.msra.mxu0 %v958_v49 }
  0x86   :  { %566 = vmatprep.subr.bf16.mxu0 %v966_v50 }
  0x89   :  { %567 = vmatpush1.bf16.msra.mxu0 %v964_v51 }
  0x8a   :  { %568 = vmatprep.subr.bf16.mxu0 %v972_v52 }
  0x8d   :  { %569 = vmatpush1.bf16.msra.mxu0 %v970_v53 }
  0x8e   :  { %570 = vmatprep.subr.bf16.mxu0 %v978_v56 }
  0x91   :  { %571 = vmatpush1.bf16.msra.mxu0 %v976_v57 }
  0xcc   :  { %v190_v61 = vpop.permute.xlu0 %189 }
  0xcd   :  { %v198_v62 = vmul.f32 %v802_v59, %v190_v61 }
  0xcf   :  { %v206_v63 = vadd.f32 %v803_v60, %v198_v62  ;;  %v776_v60 = vstv %s1297_s0 }
  0xd1   :  { %v207_v0 = vmax.f32 %v206_v63, 0.0 }
  0xd3   :  { %v242_v2 = vpack.c.bf16 %v207_v0, %v207_v0 }
  0xd5   :  { %372 = vmatmul.mubr.bf16.vlgmr.msra.gmra.mrb[0].mxu1 %v242_v2 }
  0xd6   :  { %870 = vmatpush3.bf16.msra.mxu1 %v980_v1 }
  0xd7   :  { %871 = vmatprep.subr.bf16.mxu1 %v981_v3 }
  0xda   :  { %872 = vmatpush3.bf16.msra.mxu1 %v982_v4 }
  0xdb   :  { %873 = vmatprep.subr.bf16.mxu1 %v983_v5 }
  0xde   :  { %874 = vmatpush3.bf16.msra.mxu1 %v984_v6 }
  0xdf   :  { %875 = vmatprep.subr.bf16.mxu1 %v985_v7 }
  0xe2   :  { %876 = vmatpush3.bf16.msra.mxu1 %v986_v8 }
  0xe3   :  { %877 = vmatprep.subr.bf16.mxu1 %v987_v9 }
  0xe6   :  { %878 = vmatpush3.bf16.msra.mxu1 %v988_v10 }
  0xe7   :  { %879 = vmatprep.subr.bf16.mxu1 %v989_v25 }
  0xea   :  { %880 = vmatpush3.bf16.msra.mxu1 %v990_v29 }
  0xeb   :  { %881 = vmatprep.subr.bf16.mxu1 %v991_v30 }
  0xee   :  { %882 = vmatpush3.bf16.msra.mxu1 %v992_v31 }
  0xef   :  { %883 = vmatprep.subr.bf16.mxu1 %v993_v32 }
  0xf2   :  { %884 = vmatpush3.bf16.msra.mxu1 %v994_v33 }
 0x127   :  { %v176_v18 = vpop.f32.mrb[0].mxu0 }
 0x128   :  { %v177_v19 = vadd.f32 %v176_v18, %v109_v16  ;;  %v178_v20 = vpop.f32.mrb[1].mxu0 }
 0x129   :  { %v179_v21 = vadd.f32 %v178_v20, %v113_v17  ;;  %v180_v22 = vpop.f32.mrb[2].mxu0 }
 0x12a   :  { %v183_v23 = vmax.f32 %v177_v19, 0.0  ;;  %v181_v24 = vpop.f32.mrb[3].mxu0 }
 0x12b   :  { %v184_v26 = vmax.f32 %v179_v21, 0.0 }
 0x12c   :  { %v208_v28 = vpack.c.bf16 %v183_v23, %v183_v23 }
 0x12d   :  { %v209_v27 = vpack.c.bf16 %v184_v26, %v184_v26 }
 0x12f   :  { %572 = vmatprep.mubr.bf16.mxu0 %v209_v27 }
 0x130   :  { %573 = vmatmul.mubr.bf16.vlgmr.msra.gmra.mrb[4].mxu0 %v208_v28 }
 0x1a8   :  { %v373_v34 = vpop.f32.mrb[0].mxu1 }
 0x1a9   :  { %v375_v35 = vpop.f32.mrb[1].mxu1 }
 0x1aa   :  { %v377_v36 = vpop.f32.mrb[2].mxu1 }
 0x1ab   :  { %v378_v37 = vpop.f32.mrb[3].mxu1 }
 0x203   :  { %v574_v40 = vpop.f32.mrb[4].mxu0 }
 0x204   :  { %v575_v42 = vadd.f32 %v574_v40, %v373_v34  ;;  %v576_v43 = vpop.f32.mrb[5].mxu0 }
 0x205   :  { %v577_v44 = vadd.f32 %v576_v43, %v375_v35  ;;  %v578_v45 = vpop.f32.mrb[6].mxu0 }
 0x206   :  { %v593_v46 = vadd.f32 %v586_v39, %v575_v42  ;;  %v579_v47 = vpop.f32.mrb[7].mxu0 }
 0x207   :  { %v594_v48 = vadd.f32 %v590_v41, %v577_v44 }
 0x208   :  { %v595_v49 = vmax.f32 %v593_v46, 0.0 }
 0x209   :  { %v596_v50 = vmax.f32 %v594_v48, 0.0 }
 0x20a   :  { %v597_v52 = vpack.c.bf16 %v595_v49, %v595_v49 }
 0x20b   :  { %v598_v51 = vpack.c.bf16 %v596_v50, %v596_v50 }
 0x20d   :  { %767 = vmatprep.mubr.bf16.mxu1 %v598_v51 }
 0x20e   :  { %768 = vmatmul.mubr.bf16.vlgmr.msra.gmra.mrb[4].mxu1 %v597_v52 }
 0x2e1   :  { %v885_v53 = vpop.f32.mrb[4].mxu1 }
 0x2e2   :  { %v886_v55 = vpop.f32.mrb[5].mxu1 }
 0x2e3   :  { %v887_v56 = vadd.f32 %v886_v55, %v885_v53  ;;  %v888_v57 = vpop.f32.mrb[6].mxu1 }
 0x2e4   :  { %v889_v58 = vpop.f32.mrb[7].mxu1 }
 0x2e5   :  { %v770_v59 = vadd.f32 %v887_v56, %v852_v54 }
 0x2e7   :  { %995 = vtanh.f32 %v770_v59 }
 0x2f1   :  { %v996_v61 = vpop.eup %995 }
 0x2f2   :  { %v777_v62 = vmul.f32 %v996_v61, %v776_v60 }
 0x2f4   :  { %778 = vst [vmem:[#allocation11] sm:$0xff] %v777_v62 }
 0x2f5   :  { %1096 = shalt.err (!%p1093_p8)
}
 0x2f6   :  { %s1097_s29 = scalar_lea.hbm %s1309_s12, 128 }
 0x2f7   :  { %p1098_p9 = scmp.ne.s32.totalorder %s1309_s12, %s1097_s29  ;;  %p1101_p10 = scmp.lt.u32.totalorder %s1097_s29, %s1309_s12 }
 0x2f9   :  { %p1103_p11 = pnand %p1101_p10, %p1098_p9 }
 0x2fb   :  { %1106 = shalt.err (!%p1103_p11)
}
 0x2fc   :  { %788 = dma.vmem_to_hbm [thread:$0]  %s786_s28, 128, %s1309_s12, [#allocation5]  }
 0x2fd   :  { %1113 = dma.done.wait [#allocation5], 128  }
 0x2fe   :  { %1114 = vsyncadd [#allocation5], 4294967168 }
 0x2ff   :  { %792 = vsyncpa [#allocation4], 1 }
 0x300   :  { %793 = vsyncpa [#allocation7], 1 }
 0x301   :  { %794 = vsyncpa [#allocation10], 1 }
 0x302   :  { %795 = vsyncpa [#allocation5], 1 }

</bundles_post_ra>
